<compile_context>
chip_gen: v7x
topology: tpu7x:2x2x1
jax: 0.10.0
libtpu: 0.0.40
codegen_flags: <defaults>
</compile_context>

<pallas_src>
import functools

import jax
import jax.numpy as jnp
from jax.experimental import pallas as pl
from jax.experimental.pallas import tpu as pltpu

EMBED_DIM = 256
HIDDEN_DIM = 128
SKIP_LAM = 2.0
LN_EPS = 1e-5


def block_kernel(x_ref, g_ref, beta_ref, w1_ref, b1_ref, w2_ref, b2_ref, o_ref,
                 *, skip_lam):
    # Load token tile [tm, D] in f32 for numerics.
    x = x_ref[...].astype(jnp.float32)
    d = x.shape[-1]

    # --- LayerNorm over the embed (last) dim, fused single-pass statistics ---
    s1 = jnp.sum(x, axis=-1, keepdims=True)
    s2 = jnp.sum(x * x, axis=-1, keepdims=True)
    mu = s1 * (1.0 / d)
    var = s2 * (1.0 / d) - mu * mu
    xn = (x - mu) * jax.lax.rsqrt(var + LN_EPS)
    xn = xn * g_ref[...] + beta_ref[...]

    # --- Mlp: fc1 -> ReLU -> fc2 (dropout is identity in eval) ---
    # MXU operands in the weights' dtype (bf16 by default), f32 accumulation.
    h = jnp.dot(xn.astype(w1_ref.dtype), w1_ref[...],
                preferred_element_type=jnp.float32) + b1_ref[...]
    h = jnp.maximum(h, 0.0)                      # ReLU on the f32 accumulator
    y = jnp.dot(h.astype(w2_ref.dtype), w2_ref[...],
                preferred_element_type=jnp.float32) + b2_ref[...]

    # --- residual with skip_lam scaling (f32) ---
    o_ref[...] = (x + y * (1.0 / skip_lam)).astype(o_ref.dtype)


def _choose_tm(m, max_tm=1024):
    """Largest row tile that divides m, is a multiple of 8 and <= max_tm,
    keeping >= 2 grid steps when possible (v7x megacore)."""
    tm = 8
    cand = 8
    limit = min(max_tm, m)
    while cand <= limit:
        if m % cand == 0:
            tm = cand
        cand += 8
    if tm == m and m >= 16 and (m // 2) % 8 == 0:
        tm = m // 2
    return tm


def block_forward(x, params, *, skip_lam=SKIP_LAM, max_tm=1024,
                  mxu_dtype=jnp.bfloat16):
    """x: [B, N, D] float32 (or bfloat16). Returns same shape/dtype."""
    B, N, D = x.shape
    M = B * N
    assert M % 8 == 0, "B*N must be a multiple of 8"
    x2d = x.reshape(M, D)

    gamma, beta, w1, b1, w2, b2 = params
    H = w1.shape[1]

    # Ship matmul weights in the MXU dtype (bf16: ~2x MXU rate on v6e/v7x and
    # half the weight VMEM/HBM traffic). Biases / LN params stay f32.
    w1m = w1.astype(mxu_dtype)
    w2m = w2.astype(mxu_dtype)

    tm = _choose_tm(M, max_tm)

    full = lambda i: (0, 0)  # weights/biases: same whole block at every grid step
    kernel = functools.partial(block_kernel, skip_lam=skip_lam)

    act_bytes = 2 * M * D * x.dtype.itemsize                       # x in + out
    weight_bytes = (D * H + H * D) * w1m.dtype.itemsize + (H + 2 * D + D) * 4
    cost = pl.CostEstimate(
        flops=2 * 2 * M * D * H,          # two GEMMs
        transcendentals=0,
        bytes_accessed=int(act_bytes + weight_bytes),
    )

    out = pl.pallas_call(
        kernel,
        out_shape=jax.ShapeDtypeStruct((M, D), x.dtype),
        grid_spec=pltpu.PrefetchScalarGridSpec(
            num_scalar_prefetch=0,
            grid=(M // tm,),
            in_specs=[
                pl.BlockSpec((tm, D), lambda i: (i, 0)),   # x tile
                pl.BlockSpec((1, D), full),                # LN gamma
                pl.BlockSpec((1, D), full),                # LN beta
                pl.BlockSpec((D, H), full),                # fc1 weight (in, out)
                pl.BlockSpec((1, H), full),                # fc1 bias
                pl.BlockSpec((H, D), full),                # fc2 weight (in, out)
                pl.BlockSpec((1, D), full),                # fc2 bias
            ],
            out_specs=pl.BlockSpec((tm, D), lambda i: (i, 0)),
        ),
        compiler_params=pltpu.CompilerParams(
            dimension_semantics=("parallel",)),
        cost_estimate=cost,
    )(x2d, gamma, beta, w1m, b1, w2m, b2)

    return out.reshape(B, N, D)


def init_params(key, embed_dim=EMBED_DIM, hidden_dim=HIDDEN_DIM):
    """Deterministic init matching the PyTorch module's _init_weights."""
    k1, k2, k3, k4 = jax.random.split(key, 4)

    def xavier_uniform(k, fan_in, fan_out):
        bound = (6.0 / (fan_in + fan_out)) ** 0.5
        # stored as (in, out) so the kernel does x @ W
        return jax.random.uniform(k, (fan_in, fan_out), jnp.float32, -bound, bound)

    w1 = xavier_uniform(k1, embed_dim, hidden_dim)
    w2 = xavier_uniform(k2, hidden_dim, embed_dim)
    b1 = (1e-6 * jax.random.normal(k3, (1, hidden_dim))).astype(jnp.float32)
    b2 = (1e-6 * jax.random.normal(k4, (1, embed_dim))).astype(jnp.float32)
    gamma = jnp.ones((1, embed_dim), jnp.float32)   # nn.LayerNorm default weight
    beta = jnp.zeros((1, embed_dim), jnp.float32)   # nn.LayerNorm default bias
    return gamma, beta, w1, b1, w2, b2


def block_ref(x, params, *, skip_lam=SKIP_LAM):
    """Pure-JAX f32 reference (PyTorch eval-mode semantics)."""
    gamma, beta, w1, b1, w2, b2 = params
    mu = jnp.mean(x, axis=-1, keepdims=True)
    var = jnp.mean((x - mu) ** 2, axis=-1, keepdims=True)
    xn = (x - mu) / jnp.sqrt(var + LN_EPS) * gamma[0] + beta[0]
    h = jnp.maximum(xn @ w1 + b1[0], 0.0)
    y = h @ w2 + b2[0]
    return x + y / skip_lam


if __name__ == "__main__":
    key = jax.random.PRNGKey(0)
    kx, kp = jax.random.split(key)

    B, N, D = 2, 8, EMBED_DIM
    x = jax.random.normal(kx, (B, N, D), jnp.float32)
    params = init_params(kp)

    out = block_forward(x, params)
    out = jax.block_until_ready(out)

    ref = block_ref(x, params)
    assert out.shape == (B, N, D)
    # bf16 MXU operands (f32 accumulation) -> relaxed tolerance vs pure-f32 reference.
    assert jnp.allclose(out, ref, atol=2e-2, rtol=2e-2), "mismatch vs reference"

    print("KERNEL_OK")
</pallas_src>

<mosaic_0001>
module attributes {stable_mosaic.version = 11 : i64} {
  func.func @block_kernel(%arg0: i32, %arg1: memref<8x256xf32, #tpu.memory_space<vmem>>, %arg2: memref<1x256xf32, #tpu.memory_space<vmem>>, %arg3: memref<1x256xf32, #tpu.memory_space<vmem>>, %arg4: memref<256x128xbf16, #tpu.memory_space<vmem>>, %arg5: memref<1x128xf32, #tpu.memory_space<vmem>>, %arg6: memref<128x256xbf16, #tpu.memory_space<vmem>>, %arg7: memref<1x256xf32, #tpu.memory_space<vmem>>, %arg8: memref<8x256xf32, #tpu.memory_space<vmem>>) attributes {dimension_semantics = [#tpu.dimension_semantics<parallel>], iteration_bounds = array<i64: 2>, scalar_prefetch = 0 : i64, scratch_operands = 0 : i64, tpu.core_type = #tpu.core_type<tc>, window_params = [{transform_indices = @transform_0, window_bounds = array<i64: 8, 256>}, {pipeline_mode = #tpu.pipeline_mode<synchronous>, transform_indices = @transform_1, window_bounds = array<i64: 1, 256>}, {pipeline_mode = #tpu.pipeline_mode<synchronous>, transform_indices = @transform_2, window_bounds = array<i64: 1, 256>}, {pipeline_mode = #tpu.pipeline_mode<synchronous>, transform_indices = @transform_3, window_bounds = array<i64: 256, 128>}, {pipeline_mode = #tpu.pipeline_mode<synchronous>, transform_indices = @transform_4, window_bounds = array<i64: 1, 128>}, {pipeline_mode = #tpu.pipeline_mode<synchronous>, transform_indices = @transform_5, window_bounds = array<i64: 128, 256>}, {pipeline_mode = #tpu.pipeline_mode<synchronous>, transform_indices = @transform_6, window_bounds = array<i64: 1, 256>}, {transform_indices = @transform_7, window_bounds = array<i64: 8, 256>}]} {
    %c0 = arith.constant 0 : index
    %c0_0 = arith.constant 0 : index
    %0 = vector.load %arg1[%c0, %c0_0] : memref<8x256xf32, #tpu.memory_space<vmem>>, vector<8x256xf32>
    %cst = arith.constant dense<0.000000e+00> : vector<8xf32>
    %1 = vector.multi_reduction <add>, %0, %cst [1] : vector<8x256xf32> to vector<8xf32>
    %2 = vector.shape_cast %1 : vector<8xf32> to vector<8x1xf32>
    %3 = arith.mulf %0, %0 : vector<8x256xf32>
    %cst_1 = arith.constant dense<0.000000e+00> : vector<8xf32>
    %4 = vector.multi_reduction <add>, %3, %cst_1 [1] : vector<8x256xf32> to vector<8xf32>
    %5 = vector.shape_cast %4 : vector<8xf32> to vector<8x1xf32>
    %cst_2 = arith.constant 3.906250e-03 : f32
    %6 = vector.broadcast %cst_2 : f32 to vector<8x1xf32>
    %7 = arith.mulf %2, %6 : vector<8x1xf32>
    %cst_3 = arith.constant 3.906250e-03 : f32
    %8 = vector.broadcast %cst_3 : f32 to vector<8x1xf32>
    %9 = arith.mulf %5, %8 : vector<8x1xf32>
    %10 = arith.mulf %7, %7 : vector<8x1xf32>
    %11 = arith.subf %9, %10 : vector<8x1xf32>
    %12 = vector.broadcast %7 : vector<8x1xf32> to vector<8x256xf32>
    %13 = arith.subf %0, %12 : vector<8x256xf32>
    %cst_4 = arith.constant 9.99999974E-6 : f32
    %14 = vector.broadcast %cst_4 : f32 to vector<8x1xf32>
    %15 = arith.addf %11, %14 : vector<8x1xf32>
    %16 = math.rsqrt %15 : vector<8x1xf32>
    %17 = vector.broadcast %16 : vector<8x1xf32> to vector<8x256xf32>
    %18 = arith.mulf %13, %17 : vector<8x256xf32>
    %c0_5 = arith.constant 0 : index
    %c0_6 = arith.constant 0 : index
    %19 = vector.load %arg2[%c0_5, %c0_6] : memref<1x256xf32, #tpu.memory_space<vmem>>, vector<1x256xf32>
    %20 = vector.broadcast %19 : vector<1x256xf32> to vector<8x256xf32>
    %21 = arith.mulf %18, %20 : vector<8x256xf32>
    %c0_7 = arith.constant 0 : index
    %c0_8 = arith.constant 0 : index
    %22 = vector.load %arg3[%c0_7, %c0_8] : memref<1x256xf32, #tpu.memory_space<vmem>>, vector<1x256xf32>
    %23 = vector.broadcast %22 : vector<1x256xf32> to vector<8x256xf32>
    %24 = arith.addf %21, %23 : vector<8x256xf32>
    %25 = arith.truncf %24 : vector<8x256xf32> to vector<8x256xbf16>
    %c0_9 = arith.constant 0 : index
    %c0_10 = arith.constant 0 : index
    %26 = vector.load %arg4[%c0_9, %c0_10] : memref<256x128xbf16, #tpu.memory_space<vmem>>, vector<256x128xbf16>
    %cst_11 = arith.constant dense<0.000000e+00> : vector<8x128xf32>
    %27 = tpu.matmul %25, %26, %cst_11 {dimension_numbers = #tpu.dot_dimension_numbers<[1], [0], [0], [1], [0, 0, 1, 1], [], []>} : vector<8x256xbf16>, vector<256x128xbf16>, vector<8x128xf32> -> vector<8x128xf32>
    %c0_12 = arith.constant 0 : index
    %c0_13 = arith.constant 0 : index
    %28 = vector.load %arg5[%c0_12, %c0_13] : memref<1x128xf32, #tpu.memory_space<vmem>>, vector<1x128xf32>
    %29 = vector.broadcast %28 : vector<1x128xf32> to vector<8x128xf32>
    %30 = arith.addf %27, %29 : vector<8x128xf32>
    %cst_14 = arith.constant 0.000000e+00 : f32
    %31 = vector.broadcast %cst_14 : f32 to vector<8x128xf32>
    %32 = arith.maximumf %30, %31 : vector<8x128xf32>
    %33 = arith.truncf %32 : vector<8x128xf32> to vector<8x128xbf16>
    %c0_15 = arith.constant 0 : index
    %c0_16 = arith.constant 0 : index
    %34 = vector.load %arg6[%c0_15, %c0_16] : memref<128x256xbf16, #tpu.memory_space<vmem>>, vector<128x256xbf16>
    %cst_17 = arith.constant dense<0.000000e+00> : vector<8x256xf32>
    %35 = tpu.matmul %33, %34, %cst_17 {dimension_numbers = #tpu.dot_dimension_numbers<[1], [0], [0], [1], [0, 0, 1, 1], [], []>} : vector<8x128xbf16>, vector<128x256xbf16>, vector<8x256xf32> -> vector<8x256xf32>
    %c0_18 = arith.constant 0 : index
    %c0_19 = arith.constant 0 : index
    %36 = vector.load %arg7[%c0_18, %c0_19] : memref<1x256xf32, #tpu.memory_space<vmem>>, vector<1x256xf32>
    %37 = vector.broadcast %36 : vector<1x256xf32> to vector<8x256xf32>
    %38 = arith.addf %35, %37 : vector<8x256xf32>
    %cst_20 = arith.constant 5.000000e-01 : f32
    %39 = vector.broadcast %cst_20 : f32 to vector<8x256xf32>
    %40 = arith.mulf %38, %39 : vector<8x256xf32>
    %41 = arith.addf %0, %40 : vector<8x256xf32>
    %c0_21 = arith.constant 0 : index
    %c0_22 = arith.constant 0 : index
    %42 = vector.load %arg8[%c0_21, %c0_22] : memref<8x256xf32, #tpu.memory_space<vmem>>, vector<8x256xf32>
    tpu.vector_store %arg8[%c0_21, %c0_22], %41 {strides = array<i32>} : memref<8x256xf32, #tpu.memory_space<vmem>>, vector<8x256xf32>,
    return
  }
  func.func @transform_0(%arg0: i32) -> (i32, i32) {
    %c0_i32 = arith.constant 0 : i32
    %c0_i32_0 = arith.constant 0 : i32
    return %arg0, %c0_i32 : i32, i32
  }
  func.func @transform_1(%arg0: i32) -> (i32, i32) {
    %c0_i32 = arith.constant 0 : i32
    %c0_i32_0 = arith.constant 0 : i32
    %c0_i32_1 = arith.constant 0 : i32
    return %c0_i32, %c0_i32_0 : i32, i32
  }
  func.func @transform_2(%arg0: i32) -> (i32, i32) {
    %c0_i32 = arith.constant 0 : i32
    %c0_i32_0 = arith.constant 0 : i32
    %c0_i32_1 = arith.constant 0 : i32
    return %c0_i32, %c0_i32_0 : i32, i32
  }
  func.func @transform_3(%arg0: i32) -> (i32, i32) {
    %c0_i32 = arith.constant 0 : i32
    %c0_i32_0 = arith.constant 0 : i32
    %c0_i32_1 = arith.constant 0 : i32
    return %c0_i32, %c0_i32_0 : i32, i32
  }
  func.func @transform_4(%arg0: i32) -> (i32, i32) {
    %c0_i32 = arith.constant 0 : i32
    %c0_i32_0 = arith.constant 0 : i32
    %c0_i32_1 = arith.constant 0 : i32
    return %c0_i32, %c0_i32_0 : i32, i32
  }
  func.func @transform_5(%arg0: i32) -> (i32, i32) {
    %c0_i32 = arith.constant 0 : i32
    %c0_i32_0 = arith.constant 0 : i32
    %c0_i32_1 = arith.constant 0 : i32
    return %c0_i32, %c0_i32_0 : i32, i32
  }
  func.func @transform_6(%arg0: i32) -> (i32, i32) {
    %c0_i32 = arith.constant 0 : i32
    %c0_i32_0 = arith.constant 0 : i32
    %c0_i32_1 = arith.constant 0 : i32
    return %c0_i32, %c0_i32_0 : i32, i32
  }
  func.func @transform_7(%arg0: i32) -> (i32, i32) {
    %c0_i32 = arith.constant 0 : i32
    %c0_i32_0 = arith.constant 0 : i32
    return %arg0, %c0_i32 : i32, i32
  }
}

</mosaic_0001>

<bundles_post_ra>
// kernel: tpu_custom_call.1
= control target key start
LH: loop header
LB: loop body
LE: loop exit
PB: predicated region body
PF: predicated region fallthrough
CT: control target
= control target key end

     0   :  { %12 = vsyncpa [#allocation3], 0  ;;  %s1466_s0 = inlined_call_operand.hbm [shape: f32[16,256], index: 0, kind: input, shape index: {}]   ;;  %s1467_s1 = inlined_call_operand.vmem [shape: f32[1,256], index: 1, kind: input, shape index: {}]   ;;  %s1468_s2 = inlined_call_operand.vmem [shape: f32[1,256], index: 2, kind: input, shape index: {}]   ;;  %s1469_s3 = inlined_call_operand.hbm [shape: bf16[256,128], index: 3, kind: input, shape index: {}]   ;;  %s1470_s4 = inlined_call_operand.vmem [shape: f32[1,128], index: 4, kind: input, shape index: {}]   ;;  %s1471_s5 = inlined_call_operand.hbm [shape: bf16[128,256], index: 5, kind: input, shape index: {}]   ;;  %s1472_s6 = inlined_call_operand.vmem [shape: f32[1,256], index: 6, kind: input, shape index: {}]   ;;  %s1473_s7 = inlined_call_operand.hbm [shape: f32[16,256], index: 7, kind: output, shape index: {}]  }
   0x1   :  { %14 = vsyncpa [#allocation3 + $0x1], 0 }
   0x2   :  { %15 = vsyncpa [#allocation6], 0 }
   0x3   :  { %16 = vsyncpa [#allocation4], 0 }
   0x4   :  { %18 = vsyncpa [#allocation4 + $0x1], 0  ;;  %s1207_s24 = smov 0   ;;  %s1209_s25 = smov 0  }
   0x5   :  { %s1211_s26 = smov 0   ;;  %s1213_s27 = smov 0  }
   0x6 LB: > { %s1228_s28 = sadd.s32 4294967295, %s1156_s27   ;;  %s811_s29 = sadd.s32 4294967294, %s1156_s27   ;;  %s1156_s27 = sphi %s1213_s27, %s1493_s27   ;;  %s1152_s26 = sphi %s1211_s26, %s1492_s26   ;;  %s1148_s25 = sphi %s1209_s25, %s1491_s25   ;;  %s1144_s24 = sphi %s1207_s24, %s1490_s24  }
   0x7   : > { %p44_p0 = scmp.ne.s32.totalorder %s1148_s25, %s1144_s24  ;;  %p1474_p1 = scmp.eq.s32.totalorder %s1228_s28, 0 }
   0x8   : > { %p200_p3 = scmp.eq.s32.totalorder %s811_s29, 1  ;;  %p812_p5 = scmp.ge.s32.totalorder %s1156_s27, 1 }
   0x9   : > { %p1237_p4 = por %p1474_p1, %p44_p0  ;;  %p207_p7 = scmp.lt.s32.totalorder %s1156_s27, 3 }
   0xa   : > { %p1242_p6 = por %p200_p3, %p44_p0  ;;  %s1158_s10 = smov [#allocation5]  }
   0xb   : > { %s1477_s30 = scalar_select %p1237_p4, 1, 0 }
   0xc   : > { %s1478_s8 = scalar_select %p1242_p6, 1, 0 }
   0xd   : > { %p1247_p8 = pnand %p812_p5, %p207_p7  ;;  %s225_s11 = sshll.u32 %s1158_s10, 4  ;;  %s1251_s11 = int_to_ptr.vmem [resolvable:$true] %s225_s11 }
   0xe   : > { %s1159_s13 = smov [#allocation7]   ;;  %s1000_s17 = scalar_lea.hbm %s1469_s3, 2048 }
   0xf   : > { %p898_p9 = pneg %p1247_p8  ;;  %s241_s14 = sshll.u32 %s1159_s13, 4  ;;  %s1262_s14 = int_to_ptr.vmem [resolvable:$true] %s241_s14 }
  0x10   : > { %p1001_p12 = scmp.ne.s32.totalorder %s1469_s3, %s1000_s17  ;;  %p1007_p5 = scmp.lt.u32.totalorder %s1000_s17, %s1469_s3 }
  0x11   : > { %p1258_p11 = pnand %p898_p9, %p1474_p1 }
  0x13   : > { %p1002_p13 = pneg %p1258_p11 }
  0x15   : > { %p1003_p0 = pnand %p1002_p13, %p1001_p12 }
  0x17   : > { %p1004_p3 = pneg %p1003_p0 }
  0x19   : > { %p1009_p7 = pnand %p1007_p5, %p1004_p3 }
  0x1b   : > { %1012 = shalt.err (!%p1009_p7)
}
  0x1c   : > { %s1013_s22 = scalar_lea.vmem %s1251_s11, 2048  ;;  %p1021_p2 = scmp.lt.s32.totalorder %s1251_s11, %s1251_s11 }
  0x1d   : > { %p1014_p9 = scmp.ne.s32.totalorder %s1251_s11, %s1013_s22  ;;  %p1022_p12 = scmp.lt.s32.totalorder %s1013_s22, %s1013_s22 }
  0x1f   : > { %p1016_p10 = pnand %p1014_p9, %p1002_p13  ;;  %p1023_p0 = por %p1022_p12, %p1021_p2 }
  0x21   : > { %p1017_p1 = pneg %p1016_p10 }
  0x23   : > { %p1024_p6 = pnand %p1023_p0, %p1017_p1 }
  0x25   : > { %1027 = shalt.err (!%p1024_p6)
}
  0x26   : > { %s1160_s23 = smov 64   ;;  %s1161_s29 = smov 4  }
  0x27   : > { %901 = dma.hbm_to_vmem [thread:$0]  (!%p1258_p11), %s1469_s3, 2048, %s1251_s11, [#allocation6], %s1160_s23, %s1160_s23, %s1161_s29  }
  0x28   : > { %s1028_s17 = scalar_lea.hbm %s1471_s5, 2048 }
  0x29   : > { %p1029_p2 = scmp.ne.s32.totalorder %s1471_s5, %s1028_s17  ;;  %p1035_p10 = scmp.lt.u32.totalorder %s1028_s17, %s1471_s5 }
  0x2b   : > { %p1031_p1 = pnand %p1029_p2, %p1002_p13 }
  0x2d   : > { %p1032_p6 = pneg %p1031_p1 }
  0x2f   : > { %p1037_p3 = pnand %p1035_p10, %p1032_p6 }
  0x31   : > { %1040 = shalt.err (!%p1037_p3)
}
  0x32   : > { %s1041_s11 = scalar_lea.vmem %s1262_s14, 2048  ;;  %p1049_p12 = scmp.lt.s32.totalorder %s1262_s14, %s1262_s14 }
  0x33   : > { %p1042_p5 = scmp.ne.s32.totalorder %s1262_s14, %s1041_s11  ;;  %p1050_p0 = scmp.lt.s32.totalorder %s1041_s11, %s1041_s11 }
  0x35   : > { %p1044_p7 = pnand %p1042_p5, %p1002_p13  ;;  %p1051_p2 = por %p1050_p0, %p1049_p12 }
  0x37   : > { %p1045_p9 = pneg %p1044_p7 }
  0x39   : > { %p1052_p1 = pnand %p1051_p2, %p1045_p9 }
  0x3b   : > { %1055 = shalt.err (!%p1052_p1)
}
  0x3c   : > { %s1162_s22 = smov 128   ;;  %s1163_s23 = smov 8  }
  0x3d   : > { %904 = dma.hbm_to_vmem [thread:$0]  (!%p1258_p11), %s1471_s5, 2048, %s1262_s14, [#allocation6], %s1162_s22, %s1162_s22, %s1163_s23  }
  0x3e   : > { %s1317_s13 = sadd.s32 1, %s1156_s27   ;;  %s31_s16 = sadd.s32 1, %s1152_s26 }
  0x3f   : > { %s28_s15 = ssub.s32 %s1156_s27, %s1317_s13  ;;  %p38_p6 = scmp.ne.s32.totalorder %s1152_s26, %s1148_s25 }
  0x40   : > { %p29_p13 = scmp.eq.s32.totalorder %s28_s15, 0  ;;  %p39_p10 = scmp.eq.s32.totalorder %s1156_s27, 0 }
  0x41   : > { %p1481_p5 = scmp.eq.s32.totalorder %s1228_s28, 1  ;;  %p915_p9 = scmp.lt.s32.totalorder %s1156_s27, 2 }
  0x42   : > { %s1326_s17 = scalar_select %p29_p13, %s1152_s26, %s31_s16  }
  0x43   : > { %p40_p3 = por %p39_p10, %p38_p6  ;;  %p1330_p7 = por %p1481_p5, %p38_p6 }
  0x44   : > { %s258_s12 = sand.u32 1, %s1152_s26   ;;  %s862_s14 = sshll.u32 %s1156_s27, 8 }
  0x45   : > { %s1482_s18 = scalar_select %p1330_p7, 1, 0 }
  0x46   : > { %s816_s19 = sshll.u32 %s258_s12, 4  ;;  %s1340_s11 = scalar_lea.hbm %s1466_s0, %s862_s14 }
  0x47   : > { %s262_s22 = scalar_lea.vmem [#allocation2], %s816_s19  ;;  %p1344_p11 = pnand %p915_p9, %p40_p3 }
  0x48   : > { %s270_s23 = sshll.u32 %s262_s22, 4  ;;  %s259_s10 = scalar_lea.sflag [#allocation3], %s258_s12  ;;  %s1342_s23 = int_to_ptr.vmem [resolvable:$true] %s270_s23 }
  0x49   : > { %s1056_s15 = scalar_lea.hbm %s1340_s11, 256  ;;  %p1058_p0 = pneg %p1344_p11 }
  0x4a   : > { %p1057_p12 = scmp.ne.s32.totalorder %s1340_s11, %s1056_s15  ;;  %s1061_s14 = scalar_lea.hbm %s1466_s0, 512 }
  0x4b   : > { %p1062_p13 = scmp.lt.u32.totalorder %s1340_s11, %s1466_s0  ;;  %p1063_p6 = scmp.lt.u32.totalorder %s1061_s14, %s1056_s15 }
  0x4c   : > { %p1059_p2 = pnand %p1058_p0, %p1057_p12  ;;  %p1065_p3 = scmp.lt.u32.totalorder %s1056_s15, %s1340_s11 }
  0x4d   : > { %p1064_p10 = por %p1063_p6, %p1062_p13 }
  0x4e   : > { %p1060_p1 = pneg %p1059_p2 }
  0x4f   : > { %p1066_p5 = por %p1065_p3, %p1064_p10 }
  0x51   : > { %p1067_p9 = pnand %p1066_p5, %p1060_p1 }
  0x53   : > { %1070 = shalt.err (!%p1067_p9)
}
  0x54   : > { %s1071_s12 = scalar_lea.vmem %s1342_s23, 256  ;;  %s1164_s22 = smov [#allocation2]  }
  0x55   : > { %p1072_p12 = scmp.ne.s32.totalorder %s1342_s23, %s1071_s12  ;;  %s1076_s16 = sshll.u32 %s1164_s22, 4  ;;  %s1077_s16 = int_to_ptr.vmem [resolvable:$false] %s1076_s16 }
  0x56   : > { %s1078_s19 = scalar_lea.vmem %s1077_s16, 512  ;;  %p1079_p4 = scmp.lt.s32.totalorder %s1342_s23, %s1077_s16 }
  0x57   : > { %p1074_p2 = pnand %p1072_p12, %p1058_p0  ;;  %p1080_p13 = scmp.lt.s32.totalorder %s1078_s19, %s1071_s12 }
  0x59   : > { %p1075_p7 = pneg %p1074_p2  ;;  %p1081_p6 = por %p1080_p13, %p1079_p4 }
  0x5b   : > { %p1082_p10 = pnand %p1081_p6, %p1075_p7 }
  0x5d   : > { %1085 = shalt.err (!%p1082_p10)
}
  0x5e   : > { %908 = dma.hbm_to_vmem [thread:$0]  (!%p1344_p11), %s1340_s11, 256, %s1342_s23, %s259_s10  }
  0x5f   : > { %279 = sbr.rel (%p1247_p8) target bundleno = 735 (0x2df), region = 48  ;;  %s1376_s15 = sand.u32 (!%p1247_p8), 1, %s1148_s25  }
  0x60   : > { %s820_s14 = sshll.u32 (!%p1247_p8), %s1376_s15, 4  ;;  %s282_s20 = scalar_lea.sflag (!%p1247_p8), [#allocation3], %s1376_s15 }
  0x61   : > { %s285_s21 = scalar_lea.vmem (!%p1247_p8), [#allocation2], %s820_s14  ;;  %p1484_p4 = scmp.ne.s32.totalorder (!%p1247_p8), %s1477_s30, 0 }
  0x66   : > { %1131 = dma.done.wait (%p1484_p4), %s282_s20, 256  }
  0x67   : > { %1133 = vsyncadd (%p1484_p4), %s282_s20, 4294967040  ;;  %p1485_p7 = scmp.eq.s32.totalorder %s1228_s28, 0 }
  0x69   : > { %1135 = dma.done.wait (%p1485_p7), [#allocation6], 4096   ;;  %p1486_p8 = pmov %p1485_p7 }
  0x6a   : > { %v1390_v0 = vld [vmem:[%s285_s21] sm:$0xff]  ;;  %v1392_v1 = vld [vmem:[%s285_s21 + $0x8] sm:$0xff]  ;;  %v347_v40 = vlaneseq  ;;  %s863_s16 = sshll.u32 %s1228_s28, 8  ;;  %s323_s19 = scalar_lea.vmem [#allocation8], %s820_s14 }
  0x6b   : > { %1137 = vsyncadd (%p1486_p8), [#allocation6], 4294963200  ;;  %v327_v2 = vadd.f32 %v1392_v1, %v1390_v0  ;;  %v330_v3 = vmul.f32 %v1390_v0, %v1390_v0  ;;  %v331_v4 = vmul.f32 %v1392_v1, %v1392_v1  ;;  %v958_v5 = vld [vmem:[#allocation5 + $0x40] sm:$0xff]   ;;  %v960_v8 = vld [vmem:[#allocation5 + $0x48] sm:$0xff]   ;;  %s722_s20 = sshll.u32 %s323_s19, 4  ;;  %s1422_s9 = scalar_lea.hbm %s1473_s7, %s863_s16  ;;  %s1424_s20 = int_to_ptr.vmem [resolvable:$true] %s722_s20 }
  0x6c   : > { %v959_v6 = vld [vmem:[#allocation5] sm:$0xff]   ;;  %864 = vmatprep.subr.bf16.mxu0 %v958_v5  ;;  %v961_v9 = vld [vmem:[#allocation5 + $0x8] sm:$0xff]   ;;  %v962_v10 = vld [vmem:[#allocation5 + $0x50] sm:$0xff]   ;;  %v348_v42 = vshrl.u32 %v347_v40, 7  ;;  %s708_s28 = scalar_lea.sflag [#allocation4], %s1376_s15  ;;  %s1086_s14 = scalar_lea.vmem %s1424_s20, 256 }
  0x6d   : > { %328 = vadd.xlane.f32.xlu0 %v327_v2  ;;  %v332_v7 = vadd.f32 %v331_v4, %v330_v3  ;;  %865 = vmatpush3.bf16.msra.mxu0 %v959_v6  ;;  %v963_v11 = vld [vmem:[#allocation5 + $0x10] sm:$0xff]   ;;  %v964_v12 = vld [vmem:[#allocation5 + $0x58] sm:$0xff]   ;;  %v966_v14 = vld [vmem:[#allocation5 + $0x60] sm:$0xff]   ;;  %v1165_v4 = vmov 0   ;;  %p1087_p11 = scmp.ne.s32.totalorder %s1424_s20, %s1086_s14  ;;  %p1487_p0 = scmp.ne.s32.totalorder %s1482_s18, 0 }
  0x6e   : > { %866 = vmatprep.subr.bf16.mxu0 %v960_v8  ;;  %v965_v13 = vld [vmem:[#allocation5 + $0x18] sm:$0xff]   ;;  %v967_v15 = vld [vmem:[#allocation5 + $0x20] sm:$0xff]   ;;  %v968_v16 = vld [vmem:[#allocation5 + $0x68] sm:$0xff]   ;;  %v349_v43 = vsub.s32 0, %v348_v42  ;;  %v353_v44 = vsub.s32 1, %v348_v42  ;;  %692 = vmatprep.mubr.bf16.mxu1 %v1165_v4  ;;  %s1166_s11 = smov [#allocation8]  }
  0x6f   : > { %v969_v17 = vld [vmem:[#allocation5 + $0x28] sm:$0xff]   ;;  %v970_v18 = vld [vmem:[#allocation5 + $0x70] sm:$0xff]   ;;  %v972_v20 = vld [vmem:[#allocation5 + $0x78] sm:$0xff]   ;;  %p1088_p1 = pnand %p1087_p11, %p1487_p0  ;;  %s1090_s23 = sshll.u32 %s1166_s11, 4  ;;  %s1091_s23 = int_to_ptr.vmem [resolvable:$false] %s1090_s23 }
  0x70   : > { %v971_v19 = vld [vmem:[#allocation5 + $0x30] sm:$0xff]   ;;  %v973_v21 = vld [vmem:[#allocation5 + $0x38] sm:$0xff]   ;;  %v974_v22 = vld [vmem:[#allocation7 + $0x4] ss:$8 sps:$4 sm:$0xff]   ;;  %s1092_s29 = scalar_lea.vmem %s1091_s23, 512  ;;  %p1093_p5 = scmp.lt.s32.totalorder %s1424_s20, %s1091_s23 }
  0x71   : > { %333 = vadd.xlane.f32.xlu0 %v332_v7  ;;  %867 = vmatpush3.bf16.msra.mxu0 %v961_v9  ;;  %v976_v23 = vld [vmem:[#allocation7] ss:$8 sps:$4 sm:$0xff]   ;;  %v977_v24 = vld [vmem:[#allocation7 + $0x14] ss:$8 sps:$4 sm:$0xff]   ;;  %v979_v25 = vld [vmem:[#allocation7 + $0x10] ss:$8 sps:$4 sm:$0xff]   ;;  %p1089_p3 = pneg %p1088_p1  ;;  %p1094_p9 = scmp.lt.s32.totalorder %s1092_s29, %s1086_s14 }
  0x72   : > { %868 = vmatprep.subr.bf16.mxu0 %v962_v10  ;;  %660 = vmatprep.subr.bf16.mxu1 %v974_v22  ;;  %v980_v26 = vld [vmem:[#allocation7 + $0x24] ss:$8 sps:$4 sm:$0xff]   ;;  %v982_v27 = vld [vmem:[#allocation7 + $0x20] ss:$8 sps:$4 sm:$0xff]   ;;  %v983_v28 = vld [vmem:[#allocation7 + $0x34] ss:$8 sps:$4 sm:$0xff]  }
  0x73   : > { %661 = vmatpush1.bf16.msra.mxu1 %v976_v23  ;;  %v985_v29 = vld [vmem:[#allocation7 + $0x30] ss:$8 sps:$4 sm:$0xff]   ;;  %v986_v30 = vld [vmem:[#allocation7 + $0x44] ss:$8 sps:$4 sm:$0xff]   ;;  %v988_v31 = vld [vmem:[#allocation7 + $0x40] ss:$8 sps:$4 sm:$0xff]   ;;  %p1095_p12 = por %p1094_p9, %p1093_p5 }
  0x74   : > { %662 = vmatprep.subr.bf16.mxu1 %v977_v24  ;;  %v989_v32 = vld [vmem:[#allocation7 + $0x54] ss:$8 sps:$4 sm:$0xff]   ;;  %v991_v33 = vld [vmem:[#allocation7 + $0x50] ss:$8 sps:$4 sm:$0xff]   ;;  %v345_v45 = vld [vmem:[%s1467_s1] sm:$0x3] }
  0x75   : > { %869 = vmatpush3.bf16.msra.mxu0 %v963_v11  ;;  %v359_v46 = vld [vmem:[%s1468_s2] sm:$0x3]  ;;  %v350_v49 = vrot.slane %v345_v45, %v349_v43  ;;  %v354_v50 = vrot.slane %v345_v45, %v353_v44  ;;  %v992_v62 = vld [vmem:[#allocation7 + $0x64] ss:$8 sps:$4 sm:$0xff]   ;;  %v995_v2 = vld [vmem:[#allocation7 + $0x74] ss:$8 sps:$4 sm:$0xff]   ;;  %p1096_p2 = pnand %p1095_p12, %p1089_p3 }
  0x76   : > { %870 = vmatprep.subr.bf16.mxu0 %v964_v12  ;;  %v364_v53 = vrot.slane %v359_v46, %v349_v43  ;;  %v368_v54 = vrot.slane %v359_v46, %v353_v44  ;;  %v994_v63 = vld [vmem:[#allocation7 + $0x60] ss:$8 sps:$4 sm:$0xff]   ;;  %v997_v3 = vld [vmem:[#allocation7 + $0x70] ss:$8 sps:$4 sm:$0xff]  }
  0x77   : > { %663 = vmatpush1.bf16.msra.mxu1 %v979_v25  ;;  %v824_v6 = vld [vmem:[%s1470_s4] ss:$0 sm:$0xff] }
  0x78   : > { %664 = vmatprep.subr.bf16.mxu1 %v980_v26 }
  0x79   : > { %871 = vmatpush3.bf16.msra.mxu0 %v965_v13 }
  0x7a   : > { %872 = vmatprep.subr.bf16.mxu0 %v966_v14  ;;  %v568_v14 = vld [vmem:[%s1472_s6] sm:$0x3] }
  0x7b   : > { %665 = vmatpush1.bf16.msra.mxu1 %v982_v27 }
  0x7c   : > { %666 = vmatprep.subr.bf16.mxu1 %v983_v28 }
  0x7d   : > { %873 = vmatpush3.bf16.msra.mxu0 %v967_v15  ;;  %v573_v15 = vrot.slane %v568_v14, %v349_v43 }
  0x7e   : > { %874 = vmatprep.subr.bf16.mxu0 %v968_v16  ;;  %v577_v16 = vrot.slane %v568_v14, %v353_v44 }
  0x7f   : > { %667 = vmatpush1.bf16.msra.mxu1 %v985_v29 }
  0x80   : > { %668 = vmatprep.subr.bf16.mxu1 %v986_v30 }
  0x81   : > { %875 = vmatpush3.bf16.msra.mxu0 %v969_v17 }
  0x82   : > { %876 = vmatprep.subr.bf16.mxu0 %v970_v18 }
  0x83   : > { %669 = vmatpush1.bf16.msra.mxu1 %v988_v31 }
  0x84   : > { %670 = vmatprep.subr.bf16.mxu1 %v989_v32 }
  0x85   : > { %877 = vmatpush3.bf16.msra.mxu0 %v971_v19 }
  0x86   : > { %878 = vmatprep.subr.bf16.mxu0 %v972_v20 }
  0x87   : > { %671 = vmatpush1.bf16.msra.mxu1 %v991_v33 }
  0x88   : > { %672 = vmatprep.subr.bf16.mxu1 %v992_v62 }
  0x89   : > { %879 = vmatpush3.bf16.msra.mxu0 %v973_v21 }
  0x8b   : > { %673 = vmatpush1.bf16.msra.mxu1 %v994_v63 }
  0x8c   : > { %674 = vmatprep.subr.bf16.mxu1 %v995_v2 }
  0x8f   : > { %675 = vmatpush1.bf16.msra.mxu1 %v997_v3 }
  0xfa   : > { %v329_v34 = vpop.xlane.xlu0 %328 }
  0xfb   : > { %v335_v35 = vmul.f32 0.00390625, %v329_v34 }
  0xfd   : > { %v337_v37 = vmul.f32 %v335_v35, %v335_v35  ;;  %v339_v47 = vsub.f32 %v1390_v0, %v335_v35  ;;  %v340_v48 = vsub.f32 %v1392_v1, %v335_v35 }
  0xfe   : > { %v334_v36 = vpop.xlane.xlu0 %333 }
  0xff   : > { %v336_v38 = vmul.f32 0.00390625, %v334_v36 }
 0x101   : > { %v338_v39 = vsub.f32 %v336_v38, %v337_v37 }
 0x103   : > { %v341_v41 = vadd.f32 1e-05, %v338_v39 }
 0x105   : > { %998 = vrsqrt.f32 %v341_v41 }
 0x10f   : > { %v999_v51 = vpop.eup %998 }
 0x110   : > { %v344_v52 = vmul.f32 %v999_v51, %v340_v48  ;;  %v343_v55 = vmul.f32 %v999_v51, %v339_v47 }
 0x112   : > { %v358_v56 = vmul.f32 %v354_v50, %v344_v52  ;;  %v357_v57 = vmul.f32 %v350_v49, %v343_v55 }
 0x114   : > { %v372_v58 = vadd.f32 %v368_v54, %v358_v56  ;;  %v371_v59 = vadd.f32 %v364_v53, %v357_v57 }
 0x116   : > { %v374_v60 = vpack.c.bf16 %v372_v58, %v372_v58  ;;  %v373_v61 = vpack.c.bf16 %v371_v59, %v371_v59 }
 0x118   : > { %542 = vmatprep.mubr.bf16.mxu0 %v374_v60 }
 0x119   : > { %543 = vmatmul.mubr.bf16.vlgmr.msra.gmra.mrb[0].mxu0 %v373_v61 }
 0x1ec   : > { %v880_v5 = vpop.f32.mrb[0].mxu0 }
 0x1ed   : > { %v881_v7 = vpop.f32.mrb[1].mxu0 }
 0x1ee   : > { %v882_v8 = vadd.f32 %v881_v7, %v880_v5  ;;  %v883_v9 = vpop.f32.mrb[2].mxu0 }
 0x1ef   : > { %v884_v10 = vpop.f32.mrb[3].mxu0 }
 0x1f0   : > { %v545_v11 = vadd.f32 %v882_v8, %v824_v6 }
 0x1f2   : > { %v550_v12 = vmax.f32 %v545_v11, 0.0 }
 0x1f4   : > { %v551_v13 = vpack.c.bf16 %v550_v12, %v550_v12 }
 0x1f6   : > { %693 = vmatmul.mubr.bf16.vlgmr.msra.gmra.mrb[0].mxu1 %v551_v13 }
 0x2c9   : > { %v694_v17 = vpop.f32.mrb[0].mxu1 }
 0x2ca   : > { %v695_v18 = vadd.f32 %v694_v17, %v573_v15  ;;  %v696_v19 = vpop.f32.mrb[1].mxu1 }
 0x2cb   : > { %v697_v20 = vadd.f32 %v696_v19, %v577_v16  ;;  %v698_v21 = vpop.f32.mrb[2].mxu1 }
 0x2cc   : > { %v701_v22 = vmul.f32 0.5, %v695_v18  ;;  %v699_v23 = vpop.f32.mrb[3].mxu1 }
 0x2cd   : > { %v702_v24 = vmul.f32 0.5, %v697_v20 }
 0x2ce   : > { %v703_v25 = vadd.f32 %v701_v22, %v1390_v0 }
 0x2cf   : > { %v704_v26 = vadd.f32 %v702_v24, %v1392_v1 }
 0x2d0   : > { %705 = vst [vmem:[%s323_s19] sm:$0xff] %v703_v25 }
 0x2d1   : > { %706 = vst [vmem:[%s323_s19 + $0x8] sm:$0xff] %v704_v26 }
 0x2d2   : > { %1099 = shalt.err (!%p1096_p2)
}
 0x2d3   : > { %s1100_s15 = scalar_lea.hbm %s1422_s9, 256  ;;  %s1104_s22 = scalar_lea.hbm %s1473_s7, 512 }
 0x2d4   : > { %p1101_p13 = scmp.ne.s32.totalorder %s1422_s9, %s1100_s15  ;;  %p1105_p4 = scmp.lt.u32.totalorder %s1422_s9, %s1473_s7 }
 0x2d5   : > { %p1106_p7 = scmp.lt.u32.totalorder %s1104_s22, %s1100_s15  ;;  %p1108_p11 = scmp.lt.u32.totalorder %s1100_s15, %s1422_s9 }
 0x2d6   : > { %p1102_p6 = pnand %p1101_p13, %p1487_p0 }
 0x2d7   : > { %p1107_p8 = por %p1106_p7, %p1105_p4 }
 0x2d8   : > { %p1103_p10 = pneg %p1102_p6 }
 0x2d9   : > { %p1109_p1 = por %p1108_p11, %p1107_p8 }
 0x2db   : > { %p1110_p3 = pnand %p1109_p1, %p1103_p10 }
 0x2dd   : > { %1113 = shalt.err (!%p1110_p3)
}
 0x2de   : > { %896 = dma.vmem_to_hbm [thread:$0]  (%p1487_p0), %s1424_s20, 256, %s1422_s9, %s708_s28  }
 0x2df PF: > { %s734_s21 = sand.u32 1, %s1144_s24   ;;  %p1488_p5 = scmp.ne.s32.totalorder %s1478_s8, 0 }
 0x2e0   : > { %p1489_p9 = scmp.ge.s32.totalorder %s1156_s27, 2  ;;  %s735_s30 = scalar_lea.sflag [#allocation4], %s734_s21 }
 0x2e2   : > { %p910_p12 = pnand %p1489_p9, %p1488_p5 }
 0x2e4   : > { %1139 = dma.done.wait (!%p910_p12), %s735_s30, 256  }
 0x2e5   : > { %1141 = vsyncadd (!%p910_p12), %s735_s30, 4294967040  ;;  %p21_p2 = scmp.ge.s32.totalorder %s1317_s13, 4   ;;  %s1490_s24 = smov %s1148_s25 }
 0x2e6   : > { %s1491_s25 = smov %s1152_s26  ;;  %s1492_s26 = smov %s1326_s17 }
 0x2e7   : > { %s1493_s27 = smov %s1317_s13  ;;  %23 = sbr.rel (!%p21_p2) target bundleno = 6 (0x6), region = 101 }
 0x2ee   :  { %740 = vsyncpa [#allocation3], 1 }
 0x2ef   :  { %742 = vsyncpa [#allocation3 + $0x1], 1 }
 0x2f0   :  { %743 = vsyncpa [#allocation6], 1 }
 0x2f1   :  { %744 = vsyncpa [#allocation4], 1 }
 0x2f2   :  { %746 = vsyncpa [#allocation4 + $0x1], 1 }

</bundles_post_ra>
